<compile_context>
chip_gen: v5e
topology: v5e:2x2
jax: 0.10.0
libtpu: 0.0.40
codegen_flags: <defaults>
</compile_context>

<pallas_src>
import jax
import jax.numpy as jnp
from jax.experimental import pallas as pl
from jax.experimental.pallas import tpu as pltpu


def _wave_snn_kernel(x_ref, w2_ref, prow_ref, th_ref,
                     spk1_ref, mem1_ref, spk2_ref, mem2_ref):
    batch, num_steps = x_ref.shape            # static at trace time
    H, O = w2_ref.shape

    # ---- load / unpack parameters once ------------------------------------
    x = x_ref[...]                             # (batch, num_steps)
    w2 = w2_ref[...]                           # (H, O)
    prow = prow_ref[...]                       # (1, 3H + 2O): w1|b1|beta1|b2|beta2
    w1 = prow[:, 0:H]                          # (1, H)
    b1 = prow[:, H:2 * H]                      # (1, H)
    beta1 = jnp.clip(prow[:, 2 * H:3 * H], 0.0, 1.0)
    b2 = prow[:, 3 * H:3 * H + O]              # (1, O)
    beta2 = jnp.clip(prow[:, 3 * H + O:3 * H + 2 * O], 0.0, 1.0)
    th1 = th_ref[0]                            # SMEM scalars
    th2 = th_ref[1]

    # ---- fc1 hoisted out of the recurrence (input_size == 1 -> VPU) -------
    cur1 = [x[:, t:t + 1] * w1 + b1 for t in range(num_steps)]   # each (batch, H)

    # ---- pass 1: lif1 recurrence (serial chain = LIF updates only) --------
    mem1 = jnp.zeros((batch, H), jnp.float32)
    reset1 = (mem1 - th1) > 0.0                # bool; == spk1_{t-1}
    spk1_list, mem1_list = [], []
    for t in range(num_steps):
        mem1 = beta1 * mem1 + cur1[t] - jnp.where(reset1, th1, 0.0)
        reset1 = (mem1 - th1) > 0.0
        spk1_list.append(reset1.astype(jnp.float32))
        mem1_list.append(mem1)

    # ---- fc2: ONE MXU matmul over all timesteps ----------------------------
    spk1_all = jnp.concatenate(spk1_list, axis=0)                 # (T*batch, H)
    cur2_all = jnp.dot(spk1_all, w2,
                       preferred_element_type=jnp.float32) + b2   # (T*batch, O)

    # ---- pass 2: lif2 recurrence -------------------------------------------
    mem2 = jnp.zeros((batch, O), jnp.float32)
    reset2 = (mem2 - th2) > 0.0
    spk2_list, mem2_list = [], []
    for t in range(num_steps):
        cur2_t = cur2_all[t * batch:(t + 1) * batch, :]           # static slice
        mem2 = beta2 * mem2 + cur2_t - jnp.where(reset2, th2, 0.0)
        reset2 = (mem2 - th2) > 0.0
        spk2_list.append(reset2.astype(jnp.float32))
        mem2_list.append(mem2)

    # ---- single wide lane-packed store per output ---------------------------
    spk1_ref[...] = jnp.concatenate(spk1_list, axis=1)            # (batch, T*H)
    mem1_ref[...] = jnp.concatenate(mem1_list, axis=1)
    spk2_ref[...] = jnp.concatenate(spk2_list, axis=1)            # (batch, T*O)
    mem2_ref[...] = jnp.concatenate(mem2_list, axis=1)


@jax.jit
def wave_snn_forward(x, w1, b1, beta1, th1, w2, b2, beta2, th2):
    """x: (batch, num_steps) float32 — matches PyTorch x[:, step] indexing.

    Returns (spk1_rec, mem1_rec, spk2_rec, mem2_rec) with shapes
    (num_steps, batch, H/H/O/O), matching the torch.stack(dim=0) outputs.
    """
    batch, num_steps = x.shape
    H = w1.shape[1]
    O = w2.shape[1]

    # pad batch to a multiple of 8 sublanes (vreg fill); padded rows discarded
    batch_p = max(8, ((batch + 7) // 8) * 8)
    x_p = jnp.zeros((batch_p, num_steps), jnp.float32).at[:batch].set(
        x.astype(jnp.float32))

    # merged parameter row (one VMEM input) and merged thresholds (one SMEM input)
    prow = jnp.concatenate(
        [w1, b1, beta1, b2, beta2], axis=1).astype(jnp.float32)   # (1, 3H+2O)
    th = jnp.concatenate(
        [jnp.reshape(th1, (1,)), jnp.reshape(th2, (1,))]).astype(jnp.float32)

    out_shapes = (
        jax.ShapeDtypeStruct((batch_p, num_steps * H), jnp.float32),  # spk1 packed
        jax.ShapeDtypeStruct((batch_p, num_steps * H), jnp.float32),  # mem1 packed
        jax.ShapeDtypeStruct((batch_p, num_steps * O), jnp.float32),  # spk2 packed
        jax.ShapeDtypeStruct((batch_p, num_steps * O), jnp.float32),  # mem2 packed
    )

    vmem = pl.BlockSpec(memory_space=pltpu.MemorySpace.VMEM)
    smem = pl.BlockSpec(memory_space=pltpu.MemorySpace.SMEM)

    spk1_p, mem1_p, spk2_p, mem2_p = pl.pallas_call(
        _wave_snn_kernel,
        out_shape=out_shapes,
        in_specs=[
            vmem,   # x_p   (batch_p, num_steps)
            vmem,   # w2    (H, O)
            vmem,   # prow  (1, 3H + 2O)
            smem,   # th    (2,)
        ],
        out_specs=(vmem, vmem, vmem, vmem),
    )(x_p, w2.astype(jnp.float32), prow, th)

    def unpack(packed, feat):
        # (batch_p, T*feat) -> (T, batch, feat)
        full = jnp.transpose(packed.reshape(batch_p, num_steps, feat), (1, 0, 2))
        return full[:, :batch, :]

    return (unpack(spk1_p, H), unpack(mem1_p, H),
            unpack(spk2_p, O), unpack(mem2_p, O))


def wave_snn_reference(x, w1, b1, beta1, th1, w2, b2, beta2, th2):
    """Pure-JAX reference mirroring the PyTorch/snntorch step loop."""
    batch, num_steps = x.shape
    H, O = w1.shape[1], w2.shape[1]
    mem1 = jnp.zeros((batch, H), jnp.float32)
    mem2 = jnp.zeros((batch, O), jnp.float32)
    t1, t2 = th1[0, 0], th2[0, 0]
    s1, m1r, s2, m2r = [], [], [], []
    for t in range(num_steps):
        cur1 = x[:, t:t + 1] @ w1 + b1
        reset1 = (mem1 - t1 > 0.0).astype(jnp.float32)
        mem1 = jnp.clip(beta1, 0, 1) * mem1 + cur1 - reset1 * t1
        spk1 = (mem1 - t1 > 0.0).astype(jnp.float32)
        cur2 = spk1 @ w2 + b2
        reset2 = (mem2 - t2 > 0.0).astype(jnp.float32)
        mem2 = jnp.clip(beta2, 0, 1) * mem2 + cur2 - reset2 * t2
        spk2 = (mem2 - t2 > 0.0).astype(jnp.float32)
        s1.append(spk1); m1r.append(mem1); s2.append(spk2); m2r.append(mem2)
    return (jnp.stack(s1), jnp.stack(m1r), jnp.stack(s2), jnp.stack(m2r))


if __name__ == "__main__":
    batch = 2
    num_steps = 8
    input_size = 1
    hidden_size = 32
    output_size = 2

    key = jax.random.PRNGKey(0)
    k_x, k_w1, k_b1, k_bt1, k_w2, k_b2, k_bt2 = jax.random.split(key, 7)

    # deterministic synthetic parameters (shapes from the module __init__)
    w1 = jax.random.uniform(k_w1, (input_size, hidden_size), jnp.float32, -1.0, 1.0)
    b1 = jax.random.uniform(k_b1, (1, hidden_size), jnp.float32, -1.0, 1.0)
    beta1 = jax.random.uniform(k_bt1, (1, hidden_size), jnp.float32, 0.8, 0.9)
    th1 = jnp.ones((1, 1), jnp.float32)                  # snn.Leaky default threshold
    bound2 = 1.0 / jnp.sqrt(hidden_size)
    w2 = jax.random.uniform(k_w2, (hidden_size, output_size), jnp.float32, -bound2, bound2)
    b2 = jax.random.uniform(k_b2, (1, output_size), jnp.float32, -bound2, bound2)
    beta2 = jax.random.uniform(k_bt2, (1, output_size), jnp.float32, 0.8, 0.9)
    th2 = jnp.ones((1, 1), jnp.float32)

    # synthetic "wave" input: (batch, num_steps)
    x = 2.0 * jax.random.normal(k_x, (batch, num_steps), jnp.float32)

    outs = wave_snn_forward(x, w1, b1, beta1, th1, w2, b2, beta2, th2)
    outs = jax.block_until_ready(outs)

    refs = wave_snn_reference(x, w1, b1, beta1, th1, w2, b2, beta2, th2)
    for got, want in zip(outs, refs):
        assert got.shape == want.shape, (got.shape, want.shape)
        assert jnp.allclose(got, want, atol=1e-5, rtol=1e-5)

    print("KERNEL_OK")
</pallas_src>

<mosaic_0001>
module attributes {stable_mosaic.version = 11 : i64} {
  func.func @_wave_snn_kernel(%arg0: memref<8x8xf32, #tpu.memory_space<vmem>>, %arg1: memref<32x2xf32, #tpu.memory_space<vmem>>, %arg2: memref<1x100xf32, #tpu.memory_space<vmem>>, %arg3: memref<2xf32, #tpu.memory_space<smem>>, %arg4: memref<8x256xf32, #tpu.memory_space<vmem>>, %arg5: memref<8x256xf32, #tpu.memory_space<vmem>>, %arg6: memref<8x16xf32, #tpu.memory_space<vmem>>, %arg7: memref<8x16xf32, #tpu.memory_space<vmem>>) attributes {dimension_semantics = [], scalar_prefetch = 0 : i64, scratch_operands = 0 : i64, tpu.core_type = #tpu.core_type<tc>} {
    %c0 = arith.constant 0 : index
    %c0_0 = arith.constant 0 : index
    %0 = vector.load %arg0[%c0, %c0_0] : memref<8x8xf32, #tpu.memory_space<vmem>>, vector<8x8xf32>
    %c0_1 = arith.constant 0 : index
    %c0_2 = arith.constant 0 : index
    %1 = vector.load %arg1[%c0_1, %c0_2] : memref<32x2xf32, #tpu.memory_space<vmem>>, vector<32x2xf32>
    %c0_3 = arith.constant 0 : index
    %c0_4 = arith.constant 0 : index
    %2 = vector.load %arg2[%c0_3, %c0_4] : memref<1x100xf32, #tpu.memory_space<vmem>>, vector<1x100xf32>
    %3 = vector.extract_strided_slice %2 {offsets = [0, 0], sizes = [1, 32], strides = [1, 1]} : vector<1x100xf32> to vector<1x32xf32>
    %4 = vector.extract_strided_slice %2 {offsets = [0, 32], sizes = [1, 32], strides = [1, 1]} : vector<1x100xf32> to vector<1x32xf32>
    %5 = vector.extract_strided_slice %2 {offsets = [0, 64], sizes = [1, 32], strides = [1, 1]} : vector<1x100xf32> to vector<1x32xf32>
    %cst = arith.constant 0.000000e+00 : f32
    %cst_5 = arith.constant 1.000000e+00 : f32
    %6 = vector.broadcast %cst : f32 to vector<1x32xf32>
    %7 = arith.maximumf %6, %5 : vector<1x32xf32>
    %8 = vector.broadcast %cst_5 : f32 to vector<1x32xf32>
    %9 = arith.minimumf %8, %7 : vector<1x32xf32>
    %10 = vector.extract_strided_slice %2 {offsets = [0, 96], sizes = [1, 2], strides = [1, 1]} : vector<1x100xf32> to vector<1x2xf32>
    %11 = vector.extract_strided_slice %2 {offsets = [0, 98], sizes = [1, 2], strides = [1, 1]} : vector<1x100xf32> to vector<1x2xf32>
    %cst_6 = arith.constant 0.000000e+00 : f32
    %cst_7 = arith.constant 1.000000e+00 : f32
    %12 = vector.broadcast %cst_6 : f32 to vector<1x2xf32>
    %13 = arith.maximumf %12, %11 : vector<1x2xf32>
    %14 = vector.broadcast %cst_7 : f32 to vector<1x2xf32>
    %15 = arith.minimumf %14, %13 : vector<1x2xf32>
    %c0_8 = arith.constant 0 : index
    %16 = memref.load %arg3[%c0_8] : memref<2xf32, #tpu.memory_space<smem>>
    %c1 = arith.constant 1 : index
    %17 = memref.load %arg3[%c1] : memref<2xf32, #tpu.memory_space<smem>>
    %18 = vector.extract_strided_slice %0 {offsets = [0, 0], sizes = [8, 1], strides = [1, 1]} : vector<8x8xf32> to vector<8x1xf32>
    %19 = vector.broadcast %18 : vector<8x1xf32> to vector<8x32xf32>
    %20 = vector.broadcast %3 : vector<1x32xf32> to vector<8x32xf32>
    %21 = arith.mulf %19, %20 : vector<8x32xf32>
    %22 = vector.broadcast %4 : vector<1x32xf32> to vector<8x32xf32>
    %23 = arith.addf %21, %22 : vector<8x32xf32>
    %24 = vector.extract_strided_slice %0 {offsets = [0, 1], sizes = [8, 1], strides = [1, 1]} : vector<8x8xf32> to vector<8x1xf32>
    %25 = vector.broadcast %24 : vector<8x1xf32> to vector<8x32xf32>
    %26 = vector.broadcast %3 : vector<1x32xf32> to vector<8x32xf32>
    %27 = arith.mulf %25, %26 : vector<8x32xf32>
    %28 = vector.broadcast %4 : vector<1x32xf32> to vector<8x32xf32>
    %29 = arith.addf %27, %28 : vector<8x32xf32>
    %30 = vector.extract_strided_slice %0 {offsets = [0, 2], sizes = [8, 1], strides = [1, 1]} : vector<8x8xf32> to vector<8x1xf32>
    %31 = vector.broadcast %30 : vector<8x1xf32> to vector<8x32xf32>
    %32 = vector.broadcast %3 : vector<1x32xf32> to vector<8x32xf32>
    %33 = arith.mulf %31, %32 : vector<8x32xf32>
    %34 = vector.broadcast %4 : vector<1x32xf32> to vector<8x32xf32>
    %35 = arith.addf %33, %34 : vector<8x32xf32>
    %36 = vector.extract_strided_slice %0 {offsets = [0, 3], sizes = [8, 1], strides = [1, 1]} : vector<8x8xf32> to vector<8x1xf32>
    %37 = vector.broadcast %36 : vector<8x1xf32> to vector<8x32xf32>
    %38 = vector.broadcast %3 : vector<1x32xf32> to vector<8x32xf32>
    %39 = arith.mulf %37, %38 : vector<8x32xf32>
    %40 = vector.broadcast %4 : vector<1x32xf32> to vector<8x32xf32>
    %41 = arith.addf %39, %40 : vector<8x32xf32>
    %42 = vector.extract_strided_slice %0 {offsets = [0, 4], sizes = [8, 1], strides = [1, 1]} : vector<8x8xf32> to vector<8x1xf32>
    %43 = vector.broadcast %42 : vector<8x1xf32> to vector<8x32xf32>
    %44 = vector.broadcast %3 : vector<1x32xf32> to vector<8x32xf32>
    %45 = arith.mulf %43, %44 : vector<8x32xf32>
    %46 = vector.broadcast %4 : vector<1x32xf32> to vector<8x32xf32>
    %47 = arith.addf %45, %46 : vector<8x32xf32>
    %48 = vector.extract_strided_slice %0 {offsets = [0, 5], sizes = [8, 1], strides = [1, 1]} : vector<8x8xf32> to vector<8x1xf32>
    %49 = vector.broadcast %48 : vector<8x1xf32> to vector<8x32xf32>
    %50 = vector.broadcast %3 : vector<1x32xf32> to vector<8x32xf32>
    %51 = arith.mulf %49, %50 : vector<8x32xf32>
    %52 = vector.broadcast %4 : vector<1x32xf32> to vector<8x32xf32>
    %53 = arith.addf %51, %52 : vector<8x32xf32>
    %54 = vector.extract_strided_slice %0 {offsets = [0, 6], sizes = [8, 1], strides = [1, 1]} : vector<8x8xf32> to vector<8x1xf32>
    %55 = vector.broadcast %54 : vector<8x1xf32> to vector<8x32xf32>
    %56 = vector.broadcast %3 : vector<1x32xf32> to vector<8x32xf32>
    %57 = arith.mulf %55, %56 : vector<8x32xf32>
    %58 = vector.broadcast %4 : vector<1x32xf32> to vector<8x32xf32>
    %59 = arith.addf %57, %58 : vector<8x32xf32>
    %60 = vector.extract_strided_slice %0 {offsets = [0, 7], sizes = [8, 1], strides = [1, 1]} : vector<8x8xf32> to vector<8x1xf32>
    %61 = vector.broadcast %60 : vector<8x1xf32> to vector<8x32xf32>
    %62 = vector.broadcast %3 : vector<1x32xf32> to vector<8x32xf32>
    %63 = arith.mulf %61, %62 : vector<8x32xf32>
    %64 = vector.broadcast %4 : vector<1x32xf32> to vector<8x32xf32>
    %65 = arith.addf %63, %64 : vector<8x32xf32>
    %cst_9 = arith.constant 0.000000e+00 : f32
    %66 = vector.broadcast %cst_9 : f32 to vector<8x32xf32>
    %67 = vector.broadcast %16 : f32 to vector<8x32xf32>
    %68 = arith.subf %66, %67 : vector<8x32xf32>
    %cst_10 = arith.constant 0.000000e+00 : f32
    %69 = vector.broadcast %cst_10 : f32 to vector<8x32xf32>
    %70 = arith.cmpf ogt, %68, %69 : vector<8x32xf32>
    %71 = vector.broadcast %9 : vector<1x32xf32> to vector<8x32xf32>
    %72 = arith.mulf %71, %66 : vector<8x32xf32>
    %73 = arith.addf %72, %23 : vector<8x32xf32>
    %cst_11 = arith.constant 0.000000e+00 : f32
    %74 = vector.broadcast %16 : f32 to vector<8x32xf32>
    %75 = vector.broadcast %cst_11 : f32 to vector<8x32xf32>
    %76 = arith.select %70, %74, %75 : vector<8x32xi1>, vector<8x32xf32>
    %77 = arith.subf %73, %76 : vector<8x32xf32>
    %78 = vector.broadcast %16 : f32 to vector<8x32xf32>
    %79 = arith.subf %77, %78 : vector<8x32xf32>
    %cst_12 = arith.constant 0.000000e+00 : f32
    %80 = vector.broadcast %cst_12 : f32 to vector<8x32xf32>
    %81 = arith.cmpf ogt, %79, %80 : vector<8x32xf32>
    %82 = arith.extui %81 : vector<8x32xi1> to vector<8x32xi32>
    %83 = arith.sitofp %82 : vector<8x32xi32> to vector<8x32xf32>
    %84 = vector.broadcast %9 : vector<1x32xf32> to vector<8x32xf32>
    %85 = arith.mulf %84, %77 : vector<8x32xf32>
    %86 = arith.addf %85, %29 : vector<8x32xf32>
    %cst_13 = arith.constant 0.000000e+00 : f32
    %87 = vector.broadcast %16 : f32 to vector<8x32xf32>
    %88 = vector.broadcast %cst_13 : f32 to vector<8x32xf32>
    %89 = arith.select %81, %87, %88 : vector<8x32xi1>, vector<8x32xf32>
    %90 = arith.subf %86, %89 : vector<8x32xf32>
    %91 = vector.broadcast %16 : f32 to vector<8x32xf32>
    %92 = arith.subf %90, %91 : vector<8x32xf32>
    %cst_14 = arith.constant 0.000000e+00 : f32
    %93 = vector.broadcast %cst_14 : f32 to vector<8x32xf32>
    %94 = arith.cmpf ogt, %92, %93 : vector<8x32xf32>
    %95 = arith.extui %94 : vector<8x32xi1> to vector<8x32xi32>
    %96 = arith.sitofp %95 : vector<8x32xi32> to vector<8x32xf32>
    %97 = vector.broadcast %9 : vector<1x32xf32> to vector<8x32xf32>
    %98 = arith.mulf %97, %90 : vector<8x32xf32>
    %99 = arith.addf %98, %35 : vector<8x32xf32>
    %cst_15 = arith.constant 0.000000e+00 : f32
    %100 = vector.broadcast %16 : f32 to vector<8x32xf32>
    %101 = vector.broadcast %cst_15 : f32 to vector<8x32xf32>
    %102 = arith.select %94, %100, %101 : vector<8x32xi1>, vector<8x32xf32>
    %103 = arith.subf %99, %102 : vector<8x32xf32>
    %104 = vector.broadcast %16 : f32 to vector<8x32xf32>
    %105 = arith.subf %103, %104 : vector<8x32xf32>
    %cst_16 = arith.constant 0.000000e+00 : f32
    %106 = vector.broadcast %cst_16 : f32 to vector<8x32xf32>
    %107 = arith.cmpf ogt, %105, %106 : vector<8x32xf32>
    %108 = arith.extui %107 : vector<8x32xi1> to vector<8x32xi32>
    %109 = arith.sitofp %108 : vector<8x32xi32> to vector<8x32xf32>
    %110 = vector.broadcast %9 : vector<1x32xf32> to vector<8x32xf32>
    %111 = arith.mulf %110, %103 : vector<8x32xf32>
    %112 = arith.addf %111, %41 : vector<8x32xf32>
    %cst_17 = arith.constant 0.000000e+00 : f32
    %113 = vector.broadcast %16 : f32 to vector<8x32xf32>
    %114 = vector.broadcast %cst_17 : f32 to vector<8x32xf32>
    %115 = arith.select %107, %113, %114 : vector<8x32xi1>, vector<8x32xf32>
    %116 = arith.subf %112, %115 : vector<8x32xf32>
    %117 = vector.broadcast %16 : f32 to vector<8x32xf32>
    %118 = arith.subf %116, %117 : vector<8x32xf32>
    %cst_18 = arith.constant 0.000000e+00 : f32
    %119 = vector.broadcast %cst_18 : f32 to vector<8x32xf32>
    %120 = arith.cmpf ogt, %118, %119 : vector<8x32xf32>
    %121 = arith.extui %120 : vector<8x32xi1> to vector<8x32xi32>
    %122 = arith.sitofp %121 : vector<8x32xi32> to vector<8x32xf32>
    %123 = vector.broadcast %9 : vector<1x32xf32> to vector<8x32xf32>
    %124 = arith.mulf %123, %116 : vector<8x32xf32>
    %125 = arith.addf %124, %47 : vector<8x32xf32>
    %cst_19 = arith.constant 0.000000e+00 : f32
    %126 = vector.broadcast %16 : f32 to vector<8x32xf32>
    %127 = vector.broadcast %cst_19 : f32 to vector<8x32xf32>
    %128 = arith.select %120, %126, %127 : vector<8x32xi1>, vector<8x32xf32>
    %129 = arith.subf %125, %128 : vector<8x32xf32>
    %130 = vector.broadcast %16 : f32 to vector<8x32xf32>
    %131 = arith.subf %129, %130 : vector<8x32xf32>
    %cst_20 = arith.constant 0.000000e+00 : f32
    %132 = vector.broadcast %cst_20 : f32 to vector<8x32xf32>
    %133 = arith.cmpf ogt, %131, %132 : vector<8x32xf32>
    %134 = arith.extui %133 : vector<8x32xi1> to vector<8x32xi32>
    %135 = arith.sitofp %134 : vector<8x32xi32> to vector<8x32xf32>
    %136 = vector.broadcast %9 : vector<1x32xf32> to vector<8x32xf32>
    %137 = arith.mulf %136, %129 : vector<8x32xf32>
    %138 = arith.addf %137, %53 : vector<8x32xf32>
    %cst_21 = arith.constant 0.000000e+00 : f32
    %139 = vector.broadcast %16 : f32 to vector<8x32xf32>
    %140 = vector.broadcast %cst_21 : f32 to vector<8x32xf32>
    %141 = arith.select %133, %139, %140 : vector<8x32xi1>, vector<8x32xf32>
    %142 = arith.subf %138, %141 : vector<8x32xf32>
    %143 = vector.broadcast %16 : f32 to vector<8x32xf32>
    %144 = arith.subf %142, %143 : vector<8x32xf32>
    %cst_22 = arith.constant 0.000000e+00 : f32
    %145 = vector.broadcast %cst_22 : f32 to vector<8x32xf32>
    %146 = arith.cmpf ogt, %144, %145 : vector<8x32xf32>
    %147 = arith.extui %146 : vector<8x32xi1> to vector<8x32xi32>
    %148 = arith.sitofp %147 : vector<8x32xi32> to vector<8x32xf32>
    %149 = vector.broadcast %9 : vector<1x32xf32> to vector<8x32xf32>
    %150 = arith.mulf %149, %142 : vector<8x32xf32>
    %151 = arith.addf %150, %59 : vector<8x32xf32>
    %cst_23 = arith.constant 0.000000e+00 : f32
    %152 = vector.broadcast %16 : f32 to vector<8x32xf32>
    %153 = vector.broadcast %cst_23 : f32 to vector<8x32xf32>
    %154 = arith.select %146, %152, %153 : vector<8x32xi1>, vector<8x32xf32>
    %155 = arith.subf %151, %154 : vector<8x32xf32>
    %156 = vector.broadcast %16 : f32 to vector<8x32xf32>
    %157 = arith.subf %155, %156 : vector<8x32xf32>
    %cst_24 = arith.constant 0.000000e+00 : f32
    %158 = vector.broadcast %cst_24 : f32 to vector<8x32xf32>
    %159 = arith.cmpf ogt, %157, %158 : vector<8x32xf32>
    %160 = arith.extui %159 : vector<8x32xi1> to vector<8x32xi32>
    %161 = arith.sitofp %160 : vector<8x32xi32> to vector<8x32xf32>
    %162 = vector.broadcast %9 : vector<1x32xf32> to vector<8x32xf32>
    %163 = arith.mulf %162, %155 : vector<8x32xf32>
    %164 = arith.addf %163, %65 : vector<8x32xf32>
    %cst_25 = arith.constant 0.000000e+00 : f32
    %165 = vector.broadcast %16 : f32 to vector<8x32xf32>
    %166 = vector.broadcast %cst_25 : f32 to vector<8x32xf32>
    %167 = arith.select %159, %165, %166 : vector<8x32xi1>, vector<8x32xf32>
    %168 = arith.subf %164, %167 : vector<8x32xf32>
    %169 = vector.broadcast %16 : f32 to vector<8x32xf32>
    %170 = arith.subf %168, %169 : vector<8x32xf32>
    %cst_26 = arith.constant 0.000000e+00 : f32
    %171 = vector.broadcast %cst_26 : f32 to vector<8x32xf32>
    %172 = arith.cmpf ogt, %170, %171 : vector<8x32xf32>
    %173 = arith.extui %172 : vector<8x32xi1> to vector<8x32xi32>
    %174 = arith.sitofp %173 : vector<8x32xi32> to vector<8x32xf32>
    %175 = tpu.concatenate %83, %96, %109, %122, %135, %148, %161, %174 in 0 : vector<8x32xf32>, vector<8x32xf32>, vector<8x32xf32>, vector<8x32xf32>, vector<8x32xf32>, vector<8x32xf32>, vector<8x32xf32>, vector<8x32xf32> -> vector<64x32xf32>
    %cst_27 = arith.constant dense<0.000000e+00> : vector<64x2xf32>
    %176 = tpu.matmul %175, %1, %cst_27 {dimension_numbers = #tpu.dot_dimension_numbers<[1], [0], [0], [1], [0, 0, 1, 1], [], []>} : vector<64x32xf32>, vector<32x2xf32>, vector<64x2xf32> -> vector<64x2xf32>
    %177 = vector.broadcast %10 : vector<1x2xf32> to vector<64x2xf32>
    %178 = arith.addf %176, %177 : vector<64x2xf32>
    %cst_28 = arith.constant 0.000000e+00 : f32
    %179 = vector.broadcast %cst_28 : f32 to vector<8x2xf32>
    %180 = vector.broadcast %17 : f32 to vector<8x2xf32>
    %181 = arith.subf %179, %180 : vector<8x2xf32>
    %cst_29 = arith.constant 0.000000e+00 : f32
    %182 = vector.broadcast %cst_29 : f32 to vector<8x2xf32>
    %183 = arith.cmpf ogt, %181, %182 : vector<8x2xf32>
    %184 = vector.extract_strided_slice %178 {offsets = [0, 0], sizes = [8, 2], strides = [1, 1]} : vector<64x2xf32> to vector<8x2xf32>
    %185 = vector.broadcast %15 : vector<1x2xf32> to vector<8x2xf32>
    %186 = arith.mulf %185, %179 : vector<8x2xf32>
    %187 = arith.addf %186, %184 : vector<8x2xf32>
    %cst_30 = arith.constant 0.000000e+00 : f32
    %188 = vector.broadcast %17 : f32 to vector<8x2xf32>
    %189 = vector.broadcast %cst_30 : f32 to vector<8x2xf32>
    %190 = arith.select %183, %188, %189 : vector<8x2xi1>, vector<8x2xf32>
    %191 = arith.subf %187, %190 : vector<8x2xf32>
    %192 = vector.broadcast %17 : f32 to vector<8x2xf32>
    %193 = arith.subf %191, %192 : vector<8x2xf32>
    %cst_31 = arith.constant 0.000000e+00 : f32
    %194 = vector.broadcast %cst_31 : f32 to vector<8x2xf32>
    %195 = arith.cmpf ogt, %193, %194 : vector<8x2xf32>
    %196 = arith.extui %195 : vector<8x2xi1> to vector<8x2xi32>
    %197 = arith.sitofp %196 : vector<8x2xi32> to vector<8x2xf32>
    %198 = vector.extract_strided_slice %178 {offsets = [8, 0], sizes = [8, 2], strides = [1, 1]} : vector<64x2xf32> to vector<8x2xf32>
    %199 = vector.broadcast %15 : vector<1x2xf32> to vector<8x2xf32>
    %200 = arith.mulf %199, %191 : vector<8x2xf32>
    %201 = arith.addf %200, %198 : vector<8x2xf32>
    %cst_32 = arith.constant 0.000000e+00 : f32
    %202 = vector.broadcast %17 : f32 to vector<8x2xf32>
    %203 = vector.broadcast %cst_32 : f32 to vector<8x2xf32>
    %204 = arith.select %195, %202, %203 : vector<8x2xi1>, vector<8x2xf32>
    %205 = arith.subf %201, %204 : vector<8x2xf32>
    %206 = vector.broadcast %17 : f32 to vector<8x2xf32>
    %207 = arith.subf %205, %206 : vector<8x2xf32>
    %cst_33 = arith.constant 0.000000e+00 : f32
    %208 = vector.broadcast %cst_33 : f32 to vector<8x2xf32>
    %209 = arith.cmpf ogt, %207, %208 : vector<8x2xf32>
    %210 = arith.extui %209 : vector<8x2xi1> to vector<8x2xi32>
    %211 = arith.sitofp %210 : vector<8x2xi32> to vector<8x2xf32>
    %212 = vector.extract_strided_slice %178 {offsets = [16, 0], sizes = [8, 2], strides = [1, 1]} : vector<64x2xf32> to vector<8x2xf32>
    %213 = vector.broadcast %15 : vector<1x2xf32> to vector<8x2xf32>
    %214 = arith.mulf %213, %205 : vector<8x2xf32>
    %215 = arith.addf %214, %212 : vector<8x2xf32>
    %cst_34 = arith.constant 0.000000e+00 : f32
    %216 = vector.broadcast %17 : f32 to vector<8x2xf32>
    %217 = vector.broadcast %cst_34 : f32 to vector<8x2xf32>
    %218 = arith.select %209, %216, %217 : vector<8x2xi1>, vector<8x2xf32>
    %219 = arith.subf %215, %218 : vector<8x2xf32>
    %220 = vector.broadcast %17 : f32 to vector<8x2xf32>
    %221 = arith.subf %219, %220 : vector<8x2xf32>
    %cst_35 = arith.constant 0.000000e+00 : f32
    %222 = vector.broadcast %cst_35 : f32 to vector<8x2xf32>
    %223 = arith.cmpf ogt, %221, %222 : vector<8x2xf32>
    %224 = arith.extui %223 : vector<8x2xi1> to vector<8x2xi32>
    %225 = arith.sitofp %224 : vector<8x2xi32> to vector<8x2xf32>
    %226 = vector.extract_strided_slice %178 {offsets = [24, 0], sizes = [8, 2], strides = [1, 1]} : vector<64x2xf32> to vector<8x2xf32>
    %227 = vector.broadcast %15 : vector<1x2xf32> to vector<8x2xf32>
    %228 = arith.mulf %227, %219 : vector<8x2xf32>
    %229 = arith.addf %228, %226 : vector<8x2xf32>
    %cst_36 = arith.constant 0.000000e+00 : f32
    %230 = vector.broadcast %17 : f32 to vector<8x2xf32>
    %231 = vector.broadcast %cst_36 : f32 to vector<8x2xf32>
    %232 = arith.select %223, %230, %231 : vector<8x2xi1>, vector<8x2xf32>
    %233 = arith.subf %229, %232 : vector<8x2xf32>
    %234 = vector.broadcast %17 : f32 to vector<8x2xf32>
    %235 = arith.subf %233, %234 : vector<8x2xf32>
    %cst_37 = arith.constant 0.000000e+00 : f32
    %236 = vector.broadcast %cst_37 : f32 to vector<8x2xf32>
    %237 = arith.cmpf ogt, %235, %236 : vector<8x2xf32>
    %238 = arith.extui %237 : vector<8x2xi1> to vector<8x2xi32>
    %239 = arith.sitofp %238 : vector<8x2xi32> to vector<8x2xf32>
    %240 = vector.extract_strided_slice %178 {offsets = [32, 0], sizes = [8, 2], strides = [1, 1]} : vector<64x2xf32> to vector<8x2xf32>
    %241 = vector.broadcast %15 : vector<1x2xf32> to vector<8x2xf32>
    %242 = arith.mulf %241, %233 : vector<8x2xf32>
    %243 = arith.addf %242, %240 : vector<8x2xf32>
    %cst_38 = arith.constant 0.000000e+00 : f32
    %244 = vector.broadcast %17 : f32 to vector<8x2xf32>
    %245 = vector.broadcast %cst_38 : f32 to vector<8x2xf32>
    %246 = arith.select %237, %244, %245 : vector<8x2xi1>, vector<8x2xf32>
    %247 = arith.subf %243, %246 : vector<8x2xf32>
    %248 = vector.broadcast %17 : f32 to vector<8x2xf32>
    %249 = arith.subf %247, %248 : vector<8x2xf32>
    %cst_39 = arith.constant 0.000000e+00 : f32
    %250 = vector.broadcast %cst_39 : f32 to vector<8x2xf32>
    %251 = arith.cmpf ogt, %249, %250 : vector<8x2xf32>
    %252 = arith.extui %251 : vector<8x2xi1> to vector<8x2xi32>
    %253 = arith.sitofp %252 : vector<8x2xi32> to vector<8x2xf32>
    %254 = vector.extract_strided_slice %178 {offsets = [40, 0], sizes = [8, 2], strides = [1, 1]} : vector<64x2xf32> to vector<8x2xf32>
    %255 = vector.broadcast %15 : vector<1x2xf32> to vector<8x2xf32>
    %256 = arith.mulf %255, %247 : vector<8x2xf32>
    %257 = arith.addf %256, %254 : vector<8x2xf32>
    %cst_40 = arith.constant 0.000000e+00 : f32
    %258 = vector.broadcast %17 : f32 to vector<8x2xf32>
    %259 = vector.broadcast %cst_40 : f32 to vector<8x2xf32>
    %260 = arith.select %251, %258, %259 : vector<8x2xi1>, vector<8x2xf32>
    %261 = arith.subf %257, %260 : vector<8x2xf32>
    %262 = vector.broadcast %17 : f32 to vector<8x2xf32>
    %263 = arith.subf %261, %262 : vector<8x2xf32>
    %cst_41 = arith.constant 0.000000e+00 : f32
    %264 = vector.broadcast %cst_41 : f32 to vector<8x2xf32>
    %265 = arith.cmpf ogt, %263, %264 : vector<8x2xf32>
    %266 = arith.extui %265 : vector<8x2xi1> to vector<8x2xi32>
    %267 = arith.sitofp %266 : vector<8x2xi32> to vector<8x2xf32>
    %268 = vector.extract_strided_slice %178 {offsets = [48, 0], sizes = [8, 2], strides = [1, 1]} : vector<64x2xf32> to vector<8x2xf32>
    %269 = vector.broadcast %15 : vector<1x2xf32> to vector<8x2xf32>
    %270 = arith.mulf %269, %261 : vector<8x2xf32>
    %271 = arith.addf %270, %268 : vector<8x2xf32>
    %cst_42 = arith.constant 0.000000e+00 : f32
    %272 = vector.broadcast %17 : f32 to vector<8x2xf32>
    %273 = vector.broadcast %cst_42 : f32 to vector<8x2xf32>
    %274 = arith.select %265, %272, %273 : vector<8x2xi1>, vector<8x2xf32>
    %275 = arith.subf %271, %274 : vector<8x2xf32>
    %276 = vector.broadcast %17 : f32 to vector<8x2xf32>
    %277 = arith.subf %275, %276 : vector<8x2xf32>
    %cst_43 = arith.constant 0.000000e+00 : f32
    %278 = vector.broadcast %cst_43 : f32 to vector<8x2xf32>
    %279 = arith.cmpf ogt, %277, %278 : vector<8x2xf32>
    %280 = arith.extui %279 : vector<8x2xi1> to vector<8x2xi32>
    %281 = arith.sitofp %280 : vector<8x2xi32> to vector<8x2xf32>
    %282 = vector.extract_strided_slice %178 {offsets = [56, 0], sizes = [8, 2], strides = [1, 1]} : vector<64x2xf32> to vector<8x2xf32>
    %283 = vector.broadcast %15 : vector<1x2xf32> to vector<8x2xf32>
    %284 = arith.mulf %283, %275 : vector<8x2xf32>
    %285 = arith.addf %284, %282 : vector<8x2xf32>
    %cst_44 = arith.constant 0.000000e+00 : f32
    %286 = vector.broadcast %17 : f32 to vector<8x2xf32>
    %287 = vector.broadcast %cst_44 : f32 to vector<8x2xf32>
    %288 = arith.select %279, %286, %287 : vector<8x2xi1>, vector<8x2xf32>
    %289 = arith.subf %285, %288 : vector<8x2xf32>
    %290 = vector.broadcast %17 : f32 to vector<8x2xf32>
    %291 = arith.subf %289, %290 : vector<8x2xf32>
    %cst_45 = arith.constant 0.000000e+00 : f32
    %292 = vector.broadcast %cst_45 : f32 to vector<8x2xf32>
    %293 = arith.cmpf ogt, %291, %292 : vector<8x2xf32>
    %294 = arith.extui %293 : vector<8x2xi1> to vector<8x2xi32>
    %295 = arith.sitofp %294 : vector<8x2xi32> to vector<8x2xf32>
    %296 = tpu.concatenate %83, %96, %109, %122, %135, %148, %161, %174 in 1 : vector<8x32xf32>, vector<8x32xf32>, vector<8x32xf32>, vector<8x32xf32>, vector<8x32xf32>, vector<8x32xf32>, vector<8x32xf32>, vector<8x32xf32> -> vector<8x256xf32>
    %c0_46 = arith.constant 0 : index
    %c0_47 = arith.constant 0 : index
    %297 = vector.load %arg4[%c0_46, %c0_47] : memref<8x256xf32, #tpu.memory_space<vmem>>, vector<8x256xf32>
    tpu.vector_store %arg4[%c0_46, %c0_47], %296 {strides = array<i32>} : memref<8x256xf32, #tpu.memory_space<vmem>>, vector<8x256xf32>,
    %298 = tpu.concatenate %77, %90, %103, %116, %129, %142, %155, %168 in 1 : vector<8x32xf32>, vector<8x32xf32>, vector<8x32xf32>, vector<8x32xf32>, vector<8x32xf32>, vector<8x32xf32>, vector<8x32xf32>, vector<8x32xf32> -> vector<8x256xf32>
    %c0_48 = arith.constant 0 : index
    %c0_49 = arith.constant 0 : index
    %299 = vector.load %arg5[%c0_48, %c0_49] : memref<8x256xf32, #tpu.memory_space<vmem>>, vector<8x256xf32>
    tpu.vector_store %arg5[%c0_48, %c0_49], %298 {strides = array<i32>} : memref<8x256xf32, #tpu.memory_space<vmem>>, vector<8x256xf32>,
    %300 = tpu.concatenate %197, %211, %225, %239, %253, %267, %281, %295 in 1 : vector<8x2xf32>, vector<8x2xf32>, vector<8x2xf32>, vector<8x2xf32>, vector<8x2xf32>, vector<8x2xf32>, vector<8x2xf32>, vector<8x2xf32> -> vector<8x16xf32>
    %c0_50 = arith.constant 0 : index
    %c0_51 = arith.constant 0 : index
    %301 = vector.load %arg6[%c0_50, %c0_51] : memref<8x16xf32, #tpu.memory_space<vmem>>, vector<8x16xf32>
    tpu.vector_store %arg6[%c0_50, %c0_51], %300 {strides = array<i32>} : memref<8x16xf32, #tpu.memory_space<vmem>>, vector<8x16xf32>,
    %302 = tpu.concatenate %191, %205, %219, %233, %247, %261, %275, %289 in 1 : vector<8x2xf32>, vector<8x2xf32>, vector<8x2xf32>, vector<8x2xf32>, vector<8x2xf32>, vector<8x2xf32>, vector<8x2xf32>, vector<8x2xf32> -> vector<8x16xf32>
    %c0_52 = arith.constant 0 : index
    %c0_53 = arith.constant 0 : index
    %303 = vector.load %arg7[%c0_52, %c0_53] : memref<8x16xf32, #tpu.memory_space<vmem>>, vector<8x16xf32>
    tpu.vector_store %arg7[%c0_52, %c0_53], %302 {strides = array<i32>} : memref<8x16xf32, #tpu.memory_space<vmem>>, vector<8x16xf32>,
    return
  }
}

</mosaic_0001>

<bundles_post_ra>
// kernel: wave_snn_forward.1
= control target key start
LH: loop header
LB: loop body
LE: loop exit
PB: predicated region body
PF: predicated region fallthrough
CT: control target
= control target key end

     0   :  { %13 = vsyncpa [#allocation3], 0  ;;  %s642_s27 = smov [#allocation2]   ;;  %s968_s0 = inlined_call_operand.vmem [shape: f32[8,8], index: 0, kind: input, shape index: {}]   ;;  %s969_s1 = inlined_call_operand.vmem [shape: f32[32,2], index: 1, kind: input, shape index: {}]   ;;  %s970_s2 = inlined_call_operand.vmem [shape: f32[1,100], index: 2, kind: input, shape index: {}]   ;;  %s971_s3 = inlined_call_operand.vmem [shape: f32[2], index: 3, kind: input, shape index: {}]   ;;  %s972_s4 = inlined_call_operand.vmem [shape: f32[8,256], index: 4, kind: output, shape index: {0}]   ;;  %s973_s5 = inlined_call_operand.vmem [shape: f32[8,256], index: 5, kind: output, shape index: {1}]   ;;  %s974_s6 = inlined_call_operand.vmem [shape: f32[8,16], index: 6, kind: output, shape index: {2}]   ;;  %s975_s7 = inlined_call_operand.vmem [shape: f32[8,16], index: 7, kind: output, shape index: {3}]  }
   0x1   :  { %s25_s26 = sshll.u32 %s971_s3, 4  ;;  %s26_s26 = int_to_ptr.vmem [resolvable:$true] %s25_s26 }
   0x2   :  { %28 = dma.vmem_to_smem %s26_s26, 16, %s642_s27, [#allocation3]  }
   0x3   :  { %640 = dma.done.wait [#allocation3], 16  }
   0x4   :  { %641 = vsyncadd [#allocation3], 4294967280 }
   0x5   :  { %33 = sfence }
   0x6   :  { %v34_v0 = vld [vmem:[%s968_s0] sm:$0xff]  ;;  %v643_v1 = vmov 1   ;;  %v644_v2 = vmov 0   ;;  %v645_v3 = vmov 3   ;;  %v646_v5 = vmov 2   ;;  %s647_s8 = smov 96  }
   0x7   :  { %604 = vset.pattern.permute.xlu1 %v643_v1  ;;  %603 = vset.pattern.permute.xlu0 %v644_v2  ;;  %v712_v4 = vld [vmem:[%s970_s2] ss:$0 sm:$0xff]  ;;  %v648_v6 = vmov 5   ;;  %v649_v7 = vmov 4   ;;  %v650_v8 = vmov 6   ;;  %v651_v9 = vmov 7  }
   0x8   :  { %58 = vperm.xlu1 %604, %v34_v0   ;;  %46 = vperm.xlu0 %603, %v34_v0   ;;  %s652_s0 = smov 64   ;;  %v39_v35 = vld [vmem:[%s970_s2] sm:$0x1]  ;;  %s42_s11 = sld [smem:[#allocation2]]  ;;  %v653_v49 = vmov 0.0   ;;  %v38_v1 = vld [vmem:[%s969_s1 + $0x18] sm:$0xff] }
   0x9   :  { %606 = vset.pattern.permute.xlu2 %v645_v3  ;;  %v40_v36 = vmax.f32 %v39_v35, 0.0  ;;  %v37_v2 = vld [vmem:[%s969_s1 + $0x10] sm:$0xff]  ;;  %257 = vmatpush.msra.mxu0 %v38_v1  ;;  %vm228_vm9 = vcmask 261120   ;;  %s655_s19 = smov 98   ;;  %s545_s20 = sld [smem:[#allocation2 + $0x1]] }
   0xa   :  { %70 = vperm.xlu2 %606, %v34_v0   ;;  %570 = vmatpush.msra.mxu1 %v38_v1  ;;  %s656_s21 = smov 30   ;;  %s657_s22 = smov 34  }
   0xb   :  { %v41_v37 = vmin.f32 %v40_v36, 1.0  ;;  %572 = vmatpush.msra.mxu3 %v38_v1  ;;  %258 = vmatpush.msra.mxu0 %v37_v2  ;;  %s658_s23 = smov 36   ;;  %s659_s24 = smov 38  }
   0xc   :  { %573 = vmatpush.msra.mxu1 %v37_v2  ;;  %571 = vmatpush.msra.mxu2 %v38_v1  ;;  %s660_s25 = smov 40   ;;  %s661_s28 = smov 42  }
   0xd   :  { %v737_v39 = vperm.slane %v41_v37, 0  ;;  %575 = vmatpush.msra.mxu3 %v37_v2 }
   0xe   :  { %v735_v38 = vstv %s42_s11  ;;  %574 = vmatpush.msra.mxu2 %v37_v2 }
   0xf   :  { %v100_v40 = vsub.f32 0.0, %v735_v38  ;;  %v741_v41 = vmul.f32 0.0, %v737_v39 }
  0x10   :  { %605 = vset.pattern.permute.xlu1 %v646_v5  ;;  %53 = vrot.lane.b32.xlu0 %v712_v4, %s647_s8 }
  0x11   :  { %64 = vperm.xlu1 %605, %v34_v0   ;;  %608 = vset.pattern.permute.xlu0 %v648_v6  ;;  %vm101_vm0 = vcmp.gt.f32.partialorder %v100_v40, 0.0 }
  0x12   :  { %607 = vset.pattern.permute.xlu2 %v649_v7  ;;  %v111_v42 = vsel %vm101_vm0, %v735_v38, 0.0  ;;  %v36_v7 = vld [vmem:[%s969_s1 + $0x8] sm:$0xff] }
  0x13   :  { %76 = vperm.xlu2 %607, %v34_v0   ;;  %259 = vmatpush.msra.mxu0 %v36_v7 }
  0x14   :  { %576 = vmatpush.msra.mxu1 %v36_v7  ;;  %578 = vmatpush.msra.mxu3 %v36_v7 }
  0x15   :  { %577 = vmatpush.msra.mxu2 %v36_v7 }
  0x18   :  { %82 = vperm.xlu0 %608, %v34_v0  }
  0x19   :  { %609 = vset.pattern.permute.xlu1 %v650_v8 }
  0x1a   :  { %88 = vperm.xlu1 %609, %v34_v0  }
  0x20   :  { %626 = vset.pattern.permute.xlu0 %v651_v9 }
  0x22   :  { %610 = vset.pattern.permute.xlu1 %v651_v9 }
  0x23   :  { %94 = vperm.xlu1 %610, %v34_v0  }
  0x64   :  { %v71_v12 = vpop.permute.xlu2 %70 }
  0x65   :  { %v73_v13 = vmul.f32 %v712_v4, %v71_v12 }
  0x6d   :  { %v77_v25 = vpop.permute.xlu2 %76 }
  0x6e   :  { %v79_v29 = vmul.f32 %v712_v4, %v77_v25 }
  0x7a   :  { %v59_v10 = vpop.permute.xlu1 %58  ;;  %v47_v11 = vpop.permute.xlu0 %46 }
  0x7b   :  { %v52_v14 = vmul.f32 %v712_v4, %v47_v11  ;;  %v61_v21 = vmul.f32 %v712_v4, %v59_v10  ;;  %v35_v10 = vld [vmem:[%s969_s1] sm:$0xff]  ;;  %s654_s1 = smov 32  }
  0x7c   :  { %260 = vmatpush.msra.mxu0 %v35_v10  ;;  %579 = vmatpush.msra.mxu1 %v35_v10 }
  0x7d   :  { %581 = vmatpush.msra.mxu3 %v35_v10  ;;  %580 = vmatpush.msra.mxu2 %v35_v10 }
  0x82   :  { %v54_v15 = vpop.permute.xlu0 %53 }
  0x83   :  { %v65_v16 = vpop.permute.xlu1 %64  ;;  %v56_v17 = vadd.f32 %v54_v15, %v52_v14  ;;  %v74_v18 = vadd.f32 %v73_v13, %v54_v15  ;;  %v62_v24 = vadd.f32 %v61_v21, %v54_v15  ;;  %v80_v31 = vadd.f32 %v79_v29, %v54_v15 }
  0x84   :  { %v67_v19 = vmul.f32 %v712_v4, %v65_v16 }
  0x85   :  { %107 = vrot.lane.b32.xlu2 %v56_v17, %s652_s0  ;;  %143 = vrot.lane.b32.xlu1 %v74_v18, %s652_s0 }
  0x86   :  { %v68_v20 = vadd.f32 %v67_v19, %v54_v15 }
  0x88   :  { %131 = vrot.lane.b32.xlu0 %v68_v20, %s652_s0 }
  0x8a   :  { %v83_v22 = vpop.permute.xlu0 %82 }
  0x8b   :  { %v85_v23 = vmul.f32 %v712_v4, %v83_v22 }
  0x8c   :  { %v89_v26 = vpop.permute.xlu1 %88 }
  0x8d   :  { %v86_v27 = vadd.f32 %v85_v23, %v54_v15  ;;  %v91_v28 = vmul.f32 %v712_v4, %v89_v26  ;;  %119 = vrot.lane.b32.xlu2 %v62_v24, %s652_s0 }
  0x8f   :  { %v92_v30 = vadd.f32 %v91_v28, %v54_v15 }
  0x90   :  { %167 = vrot.lane.b32.xlu0 %v86_v27, %s652_s0 }
  0x91   :  { %179 = vrot.lane.b32.xlu1 %v92_v30, %s652_s0 }
  0x95   :  { %v95_v32 = vpop.permute.xlu1 %94  ;;  %155 = vrot.lane.b32.xlu2 %v80_v31, %s652_s0 }
  0x96   :  { %v97_v33 = vmul.f32 %v712_v4, %v95_v32 }
  0x98   :  { %v98_v34 = vadd.f32 %v97_v33, %v54_v15 }
  0x9d   :  { %191 = vrot.lane.b32.xlu2 %v98_v34, %s652_s0 }
  0xdf   :  { %v108_v43 = vpop.permute.xlu2 %107 }
  0xe0   :  { %v110_v44 = vadd.f32 %v108_v43, %v741_v41 }
  0xe2   :  { %v745_v45 = vsub.f32 %v110_v44, %v111_v42 }
  0xe4   :  { %v113_v46 = vsub.f32 %v745_v45, %v735_v38  ;;  %v117_v47 = vmul.f32 %v745_v45, %v737_v39 }
  0xe6   :  { %vm114_vm1 = vcmp.gt.f32.partialorder %v113_v46, 0.0 }
  0xe7   :  { %v120_v48 = vpop.permute.xlu2 %119  ;;  %v546_v50 = vsel %vm114_vm1, 1.0, %v653_v49  ;;  %v123_v52 = vsel %vm114_vm1, %v735_v38, 0.0  ;;  %vm399_vm1 = vcmask 523264  }
  0xe8   :  { %v122_v51 = vadd.f32 %v120_v48, %v117_v47  ;;  %209 = vrot.lane.b32.xlu0 %v546_v50, %s652_s0 }
  0xea   :  { %v754_v53 = vsub.f32 %v122_v51, %v123_v52 }
  0xec   :  { %v125_v54 = vsub.f32 %v754_v53, %v735_v38  ;;  %v129_v56 = vmul.f32 %v754_v53, %v737_v39 }
  0xee   :  { %vm126_vm2 = vcmp.gt.f32.partialorder %v125_v54, 0.0 }
  0xef   :  { %v759_v55 = vsel %vm126_vm2, 1.0, %v653_v49  ;;  %v135_v59 = vsel %vm126_vm2, %v735_v38, 0.0  ;;  %v156_v11 = vpop.permute.xlu2 %155  ;;  %vm401_vm2 = vcmask 785408  }
  0xf0   :  { %211 = vrot.lane.b32.xlu1 %v759_v55, %s652_s0 }
  0xf7   :  { %v144_v63 = vpop.permute.xlu1 %143  ;;  %v192_v35 = vpop.permute.xlu2 %191 }
  0xfa   :  { %v132_v57 = vpop.permute.xlu0 %131 }
  0xfb   :  { %v134_v58 = vadd.f32 %v132_v57, %v129_v56 }
  0xfd   :  { %v766_v60 = vsub.f32 %v134_v58, %v135_v59 }
  0xff   :  { %v137_v61 = vsub.f32 %v766_v60, %v735_v38  ;;  %v141_v62 = vmul.f32 %v766_v60, %v737_v39 }
 0x101   :  { %vm138_vm3 = vcmp.gt.f32.partialorder %v137_v61, 0.0  ;;  %v146_v0 = vadd.f32 %v144_v63, %v141_v62 }
 0x102   :  { %v147_v3 = vsel %vm138_vm3, %v735_v38, 0.0  ;;  %v780_v5 = vsel %vm138_vm3, 1.0, %v653_v49  ;;  %v168_v18 = vpop.permute.xlu0 %167 }
 0x103   :  { %v782_v6 = vsub.f32 %v146_v0, %v147_v3  ;;  %213 = vrot.lane.b32.xlu2 %v780_v5, %s652_s0  ;;  %v180_v27 = vpop.permute.xlu1 %179 }
 0x105   :  { %v149_v8 = vsub.f32 %v782_v6, %v735_v38  ;;  %v153_v9 = vmul.f32 %v782_v6, %v737_v39 }
 0x107   :  { %vm796_vm4 = vcmp.gt.f32.partialorder %v149_v8, 0.0  ;;  %v158_v13 = vadd.f32 %v156_v11, %v153_v9 }
 0x108   :  { %v159_v14 = vsel %vm796_vm4, %v735_v38, 0.0  ;;  %v813_v21 = vsel %vm796_vm4, 1.0, %v653_v49 }
 0x109   :  { %v803_v15 = vsub.f32 %v158_v13, %v159_v14  ;;  %v878_v13 = vstv %s545_s20 }
 0x10b   :  { %v161_v16 = vsub.f32 %v803_v15, %v735_v38  ;;  %v165_v17 = vmul.f32 %v803_v15, %v737_v39 }
 0x10d   :  { %vm162_vm5 = vcmp.gt.f32.partialorder %v161_v16, 0.0  ;;  %v170_v19 = vadd.f32 %v168_v18, %v165_v17 }
 0x10e   :  { %v171_v20 = vsel %vm162_vm5, %v735_v38, 0.0  ;;  %v550_v22 = vsel %vm162_vm5, 1.0, %v653_v49  ;;  %vm472_vm5 = vcmask 15360  }
 0x10f   :  { %v816_v23 = vsub.f32 %v170_v19, %v171_v20  ;;  %v611_v24 = vpack.i.bf16 %v813_v21, %v550_v22 }
 0x111   :  { %v173_v25 = vsub.f32 %v816_v23, %v735_v38  ;;  %v177_v26 = vmul.f32 %v816_v23, %v737_v39  ;;  %612 = vrot.lane.b32.xlu0 %v611_v24, %s652_s0 }
 0x113   :  { %vm174_vm6 = vcmp.gt.f32.partialorder %v173_v25, 0.0  ;;  %v182_v28 = vadd.f32 %v180_v27, %v177_v26 }
 0x114   :  { %v183_v29 = vsel %vm174_vm6, %v735_v38, 0.0  ;;  %v826_v30 = vsel %vm174_vm6, 1.0, %v653_v49  ;;  %vm476_vm6 = vcmask 48128  }
 0x115   :  { %v828_v31 = vsub.f32 %v182_v28, %v183_v29  ;;  %v616_v32 = vpack.i.bf16 %v826_v30, %v759_v55  ;;  %219 = vrot.lane.b32.xlu1 %v826_v30, %s652_s0 }
 0x117   :  { %v189_v33 = vmul.f32 %v828_v31, %v737_v39  ;;  %v185_v34 = vsub.f32 %v828_v31, %v735_v38 }
 0x119   :  { %vm186_vm7 = vcmp.gt.f32.partialorder %v185_v34, 0.0  ;;  %v194_v36 = vadd.f32 %v192_v35, %v189_v33 }
 0x11a   :  { %v839_v37 = vsel %vm186_vm7, 1.0, %v653_v49  ;;  %v195_v40 = vsel %vm186_vm7, %v735_v38, 0.0  ;;  %vm474_vm7 = vcmask 31744  }
 0x11b   :  { %v196_v42 = vsub.f32 %v194_v36, %v195_v40  ;;  %221 = vrot.lane.b32.xlu2 %v839_v37, %s652_s0 }
 0x11d   :  { %v197_v43 = vsub.f32 %v196_v42, %v735_v38  ;;  %225 = vrot.lane.b32.xlu1 %v712_v4, %s654_s1 }
 0x11f   :  { %vm198_vm8 = vcmp.gt.f32.partialorder %v197_v43, 0.0 }
 0x120   :  { %v553_v44 = vsel %vm198_vm8, 1.0, %v653_v49  ;;  %vm478_vm8 = vcmask 64512  }
 0x121   :  { %v621_v46 = vpack.i.bf16 %v553_v44, %v813_v21  ;;  %223 = vrot.lane.b32.xlu0 %v553_v44, %s652_s0 }
 0x15a   :  { %v850_v47 = vpop.permute.xlu0 %209 }
 0x15b   :  { %554 = vmatmul.msk.f32.vlgmr.msra.gmra.mxu0 %vm228_vm9, %v850_v47 }
 0x15d   :  { %v214_v48 = vpop.permute.xlu2 %213 }
 0x15e   :  { %556 = vmatmul.msk.f32.vlgmr.msra.gmra.mxu1 %vm228_vm9, %v214_v48 }
 0x162   :  { %v212_v38 = vpop.permute.xlu1 %211 }
 0x163   :  { %555 = vmatmul.msk.f32.gmra.mxu0 %vm228_vm9, %v212_v38 }
 0x175   :  { %v222_v4 = vpop.permute.xlu2 %221 }
 0x176   :  { %560 = vmatmul.msk.f32.vlgmr.msra.gmra.mxu3 %vm228_vm9, %v222_v4 }
 0x183   :  { %v857_v50 = vpop.permute.xlu0 %612 }
 0x184   :  { %v615_v51 = vunpack.i.h.bf16 %v857_v50  ;;  %v614_v52 = vunpack.i.l.bf16 %v857_v50 }
 0x186   :  { %557 = vmatmul.msk.f32.gmra.mxu1 %vm228_vm9, %v615_v51  ;;  %558 = vmatmul.msk.f32.vlgmr.msra.gmra.mxu2 %vm228_vm9, %v614_v52 }
 0x187   :  { %v220_v54 = vpop.permute.xlu1 %219 }
 0x18e   :  { %559 = vmatmul.msk.f32.gmra.mxu2 %vm228_vm9, %v220_v54 }
 0x18f   :  { %v226_v56 = vpop.permute.xlu1 %225 }
 0x193   :  { %v224_v55 = vpop.permute.xlu0 %223 }
 0x194   :  { %561 = vmatmul.msk.f32.gmra.mxu3 %vm228_vm9, %v224_v55 }
 0x1d8   :  { %v262_v57 = vpop.f32.mrf.mxu0 }
 0x1d9   :  { %v263_v58 = vadd.f32 %v262_v57, %v226_v56 }
 0x1db   :  { %v268_v59 = vpop.f32.mrf.mxu1  ;;  %290 = vrot.lane.b32.xlu2 %v263_v58, %s655_s19 }
 0x1dc   :  { %v269_v61 = vadd.f32 %v268_v59, %v226_v56 }
 0x1de   :  { %314 = vrot.lane.b32.xlu1 %v269_v61, %s655_s19 }
 0x1e0   :  { %v265_v62 = vpop.f32.mrf.mxu0 }
 0x1e1   :  { %v266_v63 = vadd.f32 %v265_v62, %v226_v56 }
 0x1e3   :  { %302 = vrot.lane.b32.xlu0 %v266_v63, %s655_s19 }
 0x1f9   :  { %v280_v7 = vpop.f32.mrf.mxu3 }
 0x1fa   :  { %v281_v10 = vadd.f32 %v280_v7, %v226_v56 }
 0x203   :  { %v271_v0 = vpop.f32.mrf.mxu1 }
 0x204   :  { %v272_v1 = vadd.f32 %v271_v0, %v226_v56 }
 0x206   :  { %326 = vrot.lane.b32.xlu2 %v272_v1, %s655_s19 }
 0x209   :  { %v274_v2 = vpop.f32.mrf.mxu2 }
 0x20a   :  { %v275_v3 = vadd.f32 %v274_v2, %v226_v56 }
 0x20c   :  { %338 = vrot.lane.b32.xlu0 %v275_v3, %s655_s19 }
 0x20e   :  { %622 = vrot.lane.b32.xlu2 %v621_v46, %s654_s1 }
 0x211   :  { %v277_v8 = vpop.f32.mrf.mxu2 }
 0x212   :  { %v278_v9 = vadd.f32 %v277_v8, %v226_v56 }
 0x214   :  { %350 = vrot.lane.b32.xlu1 %v278_v9, %s655_s19  ;;  %409 = vrot.lane.b32.xlu0 %v745_v45, %s652_s0  ;;  %v287_v45 = vsub.f32 0.0, %v878_v13 }
 0x216   :  { %362 = vrot.lane.b32.xlu2 %v281_v10, %s655_s19  ;;  %vm288_vm10 = vcmp.gt.f32.partialorder %v287_v45, 0.0 }
 0x217   :  { %v283_v11 = vpop.f32.mrf.mxu3  ;;  %v294_v14 = vsel %vm288_vm10, %v878_v13, 0.0  ;;  %vm480_vm10 = vcmask 80896  }
 0x218   :  { %v284_v12 = vadd.f32 %v283_v11, %v226_v56 }
 0x21c   :  { %617 = vrot.lane.b32.xlu1 %v616_v32, %s647_s8  ;;  %421 = vrot.lane.b32.xlu0 %v803_v15, %s652_s0 }
 0x21e   :  { %417 = vrot.lane.b32.xlu2 %v782_v6, %s654_s1 }
 0x224   :  { %413 = vrot.lane.b32.xlu1 %v754_v53, %s647_s8  ;;  %374 = vrot.lane.b32.xlu0 %v284_v12, %s655_s19 }
 0x226   :  { %429 = vrot.lane.b32.xlu2 %v196_v42, %s654_s1 }
 0x22c   :  { %425 = vrot.lane.b32.xlu1 %v816_v23, %s647_s8  ;;  %s662_s8 = smov 44  }
 0x235   :  { %v291_v6 = vpop.permute.xlu2 %290 }
 0x236   :  { %v293_v15 = vadd.f32 %v291_v6, %v741_v41 }
 0x238   :  { %v295_v16 = vsub.f32 %v293_v15, %v294_v14 }
 0x23a   :  { %489 = vrot.lane.b32.xlu2 %v295_v16, %s656_s21  ;;  %v296_v53 = vsub.f32 %v295_v16, %v878_v13  ;;  %v300_v18 = vmul.f32 %v295_v16, %v737_v39 }
 0x23c   :  { %vm297_vm11 = vcmp.gt.f32.partialorder %v296_v53, 0.0 }
 0x23d   :  { %v562_v17 = vsel %vm297_vm11, 1.0, %v653_v49  ;;  %v306_v21 = vsel %vm297_vm11, %v878_v13, 0.0  ;;  %vm484_vm11 = vcmask 113664  }
 0x23e   :  { %441 = vrot.lane.b32.xlu0 %v562_v17, %s656_s21 }
 0x250   :  { %v315_v24 = vpop.permute.xlu1 %314 }
 0x255   :  { %v303_v19 = vpop.permute.xlu0 %302 }
 0x256   :  { %v305_v20 = vadd.f32 %v303_v19, %v300_v18 }
 0x258   :  { %v307_v22 = vsub.f32 %v305_v20, %v306_v21 }
 0x25a   :  { %v312_v23 = vmul.f32 %v307_v22, %v737_v39  ;;  %493 = vrot.lane.b32.xlu0 %v307_v22, %s654_s1  ;;  %v308_v41 = vsub.f32 %v307_v22, %v878_v13 }
 0x25c   :  { %vm309_vm12 = vcmp.gt.f32.partialorder %v308_v41, 0.0  ;;  %v317_v25 = vadd.f32 %v315_v24, %v312_v23 }
 0x25d   :  { %v563_v26 = vsel %vm309_vm12, 1.0, %v653_v49  ;;  %v318_v27 = vsel %vm309_vm12, %v878_v13, 0.0  ;;  %vm486_vm12 = vcmask 130048  }
 0x25e   :  { %445 = vrot.lane.b32.xlu1 %v563_v26, %s654_s1  ;;  %v319_v28 = vsub.f32 %v317_v25, %v318_v27 }
 0x260   :  { %497 = vrot.lane.b32.xlu2 %v319_v28, %s657_s22  ;;  %v320_v29 = vsub.f32 %v319_v28, %v878_v13  ;;  %v324_v30 = vmul.f32 %v319_v28, %v737_v39  ;;  %v327_v32 = vpop.permute.xlu2 %326 }
 0x262   :  { %vm321_vm13 = vcmp.gt.f32.partialorder %v320_v29, 0.0  ;;  %v329_v33 = vadd.f32 %v327_v32, %v324_v30 }
 0x263   :  { %v330_v34 = vsel %vm321_vm13, %v878_v13, 0.0  ;;  %v564_v36 = vsel %vm321_vm13, 1.0, %v653_v49 }
 0x264   :  { %v331_v35 = vsub.f32 %v329_v33, %v330_v34 }
 0x266   :  { %449 = vrot.lane.b32.xlu1 %v564_v36, %s657_s22  ;;  %v332_v40 = vsub.f32 %v331_v35, %v878_v13  ;;  %v336_v43 = vmul.f32 %v331_v35, %v737_v39 }
 0x268   :  { %vm333_vm14 = vcmp.gt.f32.partialorder %v332_v40, 0.0  ;;  %v623_v38 = vpop.permute.xlu2 %622 }
 0x269   :  { %v565_v42 = vsel %vm333_vm14, 1.0, %v653_v49  ;;  %v342_v48 = vsel %vm333_vm14, %v878_v13, 0.0  ;;  %v625_v12 = vunpack.i.h.bf16 %v623_v38  ;;  %v624_v45 = vunpack.i.l.bf16 %v623_v38 }
 0x26a   :  { %453 = vrot.lane.b32.xlu0 %v565_v42, %s658_s23 }
 0x26e   :  { %501 = vrot.lane.b32.xlu1 %v331_v35, %s658_s23 }
 0x270   :  { %v363_v62 = vpop.permute.xlu2 %362 }
 0x27e   :  { %v339_v44 = vpop.permute.xlu0 %338 }
 0x27f   :  { %v341_v46 = vadd.f32 %v339_v44, %v336_v43 }
 0x281   :  { %v343_v4 = vsub.f32 %v341_v46, %v342_v48 }
 0x283   :  { %505 = vrot.lane.b32.xlu0 %v343_v4, %s659_s24  ;;  %v344_v51 = vsub.f32 %v343_v4, %v878_v13  ;;  %v348_v54 = vmul.f32 %v343_v4, %v737_v39 }
 0x285   :  { %vm345_vm15 = vcmp.gt.f32.partialorder %v344_v51, 0.0 }
 0x286   :  { %v351_v55 = vpop.permute.xlu1 %350  ;;  %v410_v56 = vpop.permute.xlu0 %409  ;;  %v566_v57 = vsel %vm345_vm15, 1.0, %v653_v49  ;;  %v354_v59 = vsel %vm345_vm15, %v878_v13, 0.0 }
 0x287   :  { %v353_v58 = vadd.f32 %v351_v55, %v348_v54  ;;  %457 = vrot.lane.b32.xlu2 %v566_v57, %s659_s24 }
 0x289   :  { %v355_v61 = vsub.f32 %v353_v58, %v354_v59 }
 0x28b   :  { %v360_v63 = vmul.f32 %v355_v61, %v737_v39  ;;  %v356_v0 = vsub.f32 %v355_v61, %v878_v13 }
 0x28d   :  { %vm357_vm0 = vcmp.gt.f32.partialorder %v356_v0, 0.0  ;;  %v365_v1 = vadd.f32 %v363_v62, %v360_v63 }
 0x28e   :  { %v618_v2 = vpop.permute.xlu1 %617  ;;  %v422_v3 = vpop.permute.xlu0 %421  ;;  %v567_v7 = vsel %vm357_vm0, 1.0, %v653_v49  ;;  %v366_v8 = vsel %vm357_vm0, %v878_v13, 0.0 }
 0x28f   :  { %v620_v9 = vunpack.i.h.bf16 %v618_v2  ;;  %v619_v10 = vunpack.i.l.bf16 %v618_v2  ;;  %v367_v11 = vsub.f32 %v365_v1, %v366_v8  ;;  %461 = vrot.lane.b32.xlu1 %v567_v7, %s660_s25  ;;  %509 = vrot.lane.b32.xlu2 %v355_v61, %s660_s25 }
 0x291   :  { %v403_v14 = vsel %vm228_vm9, %v614_v52, %v620_v9  ;;  %v398_v6 = vsel %vm228_vm9, %v850_v47, %v619_v10  ;;  %v368_v15 = vsub.f32 %v367_v11, %v878_v13 }
 0x292   :  { %v400_v16 = vsel %vm399_vm1, %v398_v6, %v780_v5  ;;  %v404_v53 = vsel %vm399_vm1, %v403_v14, %v839_v37  ;;  %v418_v5 = vpop.permute.xlu2 %417  ;;  %v372_v37 = vmul.f32 %v367_v11, %v737_v39 }
 0x293   :  { %vm921_vm3 = vcmp.gt.f32.partialorder %v368_v15, 0.0  ;;  %v402_v18 = vsel %vm401_vm2, %v400_v16, %v624_v45  ;;  %v405_v50 = vsel %vm401_vm2, %v404_v53, %v625_v12 }
 0x294   :  { %v568_v47 = vsel %vm921_vm3, 1.0, %v653_v49  ;;  %406 = vst [vmem:[%s972_s4] sm:$0xff] %v402_v18  ;;  %v378_v23 = vsel %vm921_vm3, %v878_v13, 0.0 }
 0x295   :  { %465 = vrot.lane.b32.xlu0 %v568_v47, %s661_s28  ;;  %407 = vst [vmem:[%s972_s4 + $0x8] sm:$0xff] %v405_v50 }
 0x296   :  { %v414_v52 = vpop.permute.xlu1 %413  ;;  %v375_v19 = vpop.permute.xlu0 %374 }
 0x297   :  { %v432_v20 = vsel %vm228_vm9, %v410_v56, %v414_v52  ;;  %v377_v21 = vadd.f32 %v375_v19, %v372_v37  ;;  %513 = vrot.lane.b32.xlu1 %v367_v11, %s661_s28 }
 0x298   :  { %v433_v22 = vsel %vm399_vm1, %v432_v20, %v766_v60 }
 0x299   :  { %v434_v41 = vsel %vm401_vm2, %v433_v22, %v418_v5  ;;  %v379_v24 = vsub.f32 %v377_v21, %v378_v23 }
 0x29a   :  { %438 = vst [vmem:[%s973_s5] sm:$0xff] %v434_v41  ;;  %v430_v27 = vpop.permute.xlu2 %429 }
 0x29b   :  { %v380_v39 = vsub.f32 %v379_v24, %v878_v13 }
 0x29d   :  { %517 = vrot.lane.b32.xlu0 %v379_v24, %s662_s8  ;;  %vm381_vm4 = vcmp.gt.f32.partialorder %v380_v39, 0.0 }
 0x29e   :  { %v426_v25 = vpop.permute.xlu1 %425  ;;  %v569_v26 = vsel %vm381_vm4, 1.0, %v653_v49 }
 0x29f   :  { %v435_v60 = vsel %vm228_vm9, %v422_v3, %v426_v25  ;;  %469 = vrot.lane.b32.xlu2 %v569_v26, %s662_s8  ;;  %vm482_vm9 = vcmask 97280  }
 0x2a0   :  { %v436_v28 = vsel %vm399_vm1, %v435_v60, %v828_v31 }
 0x2a1   :  { %v437_v29 = vsel %vm401_vm2, %v436_v28, %v430_v27 }
 0x2a2   :  { %439 = vst [vmem:[%s973_s5 + $0x8] sm:$0xff] %v437_v29  ;;  %v490_v13 = vpop.permute.xlu2 %489 }
 0x2b0   :  { %v442_v32 = vpop.permute.xlu0 %441 }
 0x2ba   :  { %v498_v33 = vpop.permute.xlu2 %497 }
 0x2cc   :  { %v494_v34 = vpop.permute.xlu0 %493 }
 0x2cd   :  { %v520_v38 = vsel %vm472_vm5, %v490_v13, %v494_v34 }
 0x2ce   :  { %v521_v57 = vsel %vm474_vm7, %v520_v38, %v498_v33 }
 0x2d0   :  { %v446_v30 = vpop.permute.xlu1 %445 }
 0x2d1   :  { %v473_v44 = vsel %vm472_vm5, %v442_v32, %v446_v30 }
 0x2d8   :  { %v450_v35 = vpop.permute.xlu1 %449 }
 0x2d9   :  { %v475_v46 = vsel %vm474_vm7, %v473_v44, %v450_v35 }
 0x2dc   :  { %v454_v36 = vpop.permute.xlu0 %453 }
 0x2dd   :  { %v477_v48 = vsel %vm476_vm6, %v475_v46, %v454_v36 }
 0x2e0   :  { %v502_v40 = vpop.permute.xlu1 %501 }
 0x2e1   :  { %v458_v49 = vpop.permute.xlu2 %457  ;;  %v522_v59 = vsel %vm476_vm6, %v521_v57, %v502_v40 }
 0x2e2   :  { %v479_v4 = vsel %vm478_vm8, %v477_v48, %v458_v49 }
 0x2e9   :  { %v510_v43 = vpop.permute.xlu2 %509 }
 0x2f5   :  { %v506_v42 = vpop.permute.xlu0 %505 }
 0x2f6   :  { %v523_v61 = vsel %vm478_vm8, %v522_v59, %v506_v42 }
 0x2f7   :  { %v524_v63 = vsel %vm480_vm10, %v523_v61, %v510_v43 }
 0x2f9   :  { %v470_v55 = vpop.permute.xlu2 %469 }
 0x301   :  { %v462_v31 = vpop.permute.xlu1 %461 }
 0x302   :  { %v481_v51 = vsel %vm480_vm10, %v479_v4, %v462_v31 }
 0x307   :  { %v466_v54 = vpop.permute.xlu0 %465 }
 0x308   :  { %v483_v56 = vsel %vm482_vm9, %v481_v51, %v466_v54 }
 0x309   :  { %v485_v58 = vsel %vm484_vm11, %v483_v56, %v470_v55  ;;  %v514_v62 = vpop.permute.xlu1 %513 }
 0x30a   :  { %487 = vst.msk [vmem:[%s974_s6] sm:$0xff] %vm486_vm12, %v485_v58  ;;  %v525_v0 = vsel %vm482_vm9, %v524_v63, %v514_v62 }
 0x30f   :  { %v518_v1 = vpop.permute.xlu0 %517 }
 0x310   :  { %v526_v2 = vsel %vm484_vm11, %v525_v0, %v518_v1 }
 0x311   :  { %527 = vst.msk [vmem:[%s975_s7] sm:$0xff] %vm486_vm12, %v526_v2 }
 0x312   :  { %544 = vsyncpa [#allocation3], 1 }

</bundles_post_ra>
